<compile_context>
chip_gen: v7x
topology: tpu7x:2x2x1
jax: 0.10.0
libtpu: 0.0.40
codegen_flags: <defaults>
</compile_context>

<pallas_src>
import jax
import jax.numpy as jnp
from jax.experimental import pallas as pl
from jax.experimental.pallas import tpu as pltpu

LANE = 128            # lane width / MXU-friendly feature padding
TILE_M = 128          # batch tile (rows per grid step)


def _sigmoid_dnn_kernel(x_ref, w1_ref, b1_ref, w2_ref, b2_ref, w3_ref, b3_ref,
                        o_ref):
    x = x_ref[...]                                               # bf16 (TILE_M, Dp)
    # Layer 1: Linear (bf16 MXU, f32 acc) + Sigmoid (f32)
    h1 = jnp.dot(x, w1_ref[...], preferred_element_type=jnp.float32)
    h1 = jax.nn.sigmoid(h1 + b1_ref[...]).astype(jnp.bfloat16)
    # Layer 2: Linear + Sigmoid
    h2 = jnp.dot(h1, w2_ref[...], preferred_element_type=jnp.float32)
    h2 = jax.nn.sigmoid(h2 + b2_ref[...]).astype(jnp.bfloat16)
    # Output layer: Linear (regressor head, no activation)
    out = jnp.dot(h2, w3_ref[...], preferred_element_type=jnp.float32)
    o_ref[...] = (out + b3_ref[...]).astype(o_ref.dtype)         # lane-dense store


def _pad2(a, rows, cols, dtype):
    """Zero-pad a 2-D array up to (rows, cols) and cast."""
    out = jnp.zeros((rows, cols), dtype)
    return out.at[: a.shape[0], : a.shape[1]].set(a.astype(dtype))


def _round_up(n, m):
    return pl.cdiv(n, m) * m


def prepare_params(params):
    """Pad feature dims to 128 lanes and cast weights to bf16 (done ONCE)."""
    w1, b1 = params["w1"], params["b1"]
    w2, b2 = params["w2"], params["b2"]
    w3, b3 = params["w3"], params["b3"]
    d_in, d_h = w1.shape
    d_out = w3.shape[1]
    d_in_p = _round_up(d_in, LANE)
    d_h_p = _round_up(d_h, LANE)
    d_out_p = _round_up(d_out, LANE)
    return {
        # padded W2/W3 *input rows* are zero, so padded hidden units
        # (sigmoid(0)=0.5) contribute exactly 0 downstream.
        "w1": _pad2(w1, d_in_p, d_h_p, jnp.bfloat16),
        "b1": _pad2(b1, 1, d_h_p, jnp.float32),
        "w2": _pad2(w2, d_h_p, d_h_p, jnp.bfloat16),
        "b2": _pad2(b2, 1, d_h_p, jnp.float32),
        "w3": _pad2(w3, d_h_p, d_out_p, jnp.bfloat16),
        "b3": _pad2(b3, 1, d_out_p, jnp.float32),
        "d_in": d_in, "d_out": d_out,
        "d_in_p": d_in_p, "d_h_p": d_h_p, "d_out_p": d_out_p,
    }


def sigmoid_dnn_forward(x, pp, *, tile_m=TILE_M):
    """x: [B, D_in] float32.  pp: output of prepare_params()."""
    B = x.shape[0]
    b_pad = _round_up(B, tile_m)
    d_in_p, d_h_p, d_out_p = pp["d_in_p"], pp["d_h_p"], pp["d_out_p"]

    # Host-side pad of x: batch to a tile multiple, features to lane width;
    # cast to bf16 (halves x DMA traffic; MXU is bf16-native on v6e/v7x).
    x_p = _pad2(x, b_pad, d_in_p, jnp.bfloat16)

    grid = (b_pad // tile_m,)
    const = lambda i: (0, 0)       # weights/biases stay VMEM-resident
    batch = lambda i: (i, 0)       # x / out stream over the batch grid

    out_padded = pl.pallas_call(
        _sigmoid_dnn_kernel,
        out_shape=jax.ShapeDtypeStruct((b_pad, d_out_p), jnp.float32),
        grid=grid,
        in_specs=[
            pl.BlockSpec((tile_m, d_in_p), batch),
            pl.BlockSpec((d_in_p, d_h_p), const),
            pl.BlockSpec((1, d_h_p), const),
            pl.BlockSpec((d_h_p, d_h_p), const),
            pl.BlockSpec((1, d_h_p), const),
            pl.BlockSpec((d_h_p, d_out_p), const),
            pl.BlockSpec((1, d_out_p), const),
        ],
        out_specs=pl.BlockSpec((tile_m, d_out_p), batch),
        compiler_params=pltpu.CompilerParams(
            dimension_semantics=("parallel",),
            vmem_limit_bytes=32 * 1024 * 1024,
        ),
    )(x_p, pp["w1"], pp["b1"], pp["w2"], pp["b2"], pp["w3"], pp["b3"])

    # Slice away batch / output-lane padding.
    return out_padded[:B, : pp["d_out"]]


def init_params(key, d_in, d_hidden, d_out):
    ks = jax.random.split(key, 6)
    # Deterministic, nn.Linear-style uniform init (synthetic).
    def lin(kw, kb, fan_in, fan_out):
        bound = 1.0 / jnp.sqrt(fan_in)
        w = jax.random.uniform(kw, (fan_in, fan_out), jnp.float32, -bound, bound)
        b = jax.random.uniform(kb, (1, fan_out), jnp.float32, -bound, bound)
        return w, b
    w1, b1 = lin(ks[0], ks[1], d_in, d_hidden)
    w2, b2 = lin(ks[2], ks[3], d_hidden, d_hidden)
    w3, b3 = lin(ks[4], ks[5], d_hidden, d_out)
    return {"w1": w1, "b1": b1, "w2": w2, "b2": b2, "w3": w3, "b3": b3}


def _reference(x, p):
    h1 = jax.nn.sigmoid(x @ p["w1"] + p["b1"])
    h2 = jax.nn.sigmoid(h1 @ p["w2"] + p["b2"])
    return h2 @ p["w3"] + p["b3"]


if __name__ == "__main__":
    key = jax.random.PRNGKey(0)
    k_x, k_p = jax.random.split(key)

    B, D_IN, D_HIDDEN, D_OUT = 8, 16, 32, 1
    x = jax.random.normal(k_x, (B, D_IN), jnp.float32)
    params = init_params(k_p, D_IN, D_HIDDEN, D_OUT)
    pp = prepare_params(params)

    y = sigmoid_dnn_forward(x, pp)
    jax.block_until_ready(y)

    y_ref = _reference(x, params)
    assert y.shape == (B, D_OUT)
    # bf16 operands (f32 accumulation) vs. full-f32 reference -> looser tol.
    assert jnp.allclose(y, y_ref, atol=5e-2, rtol=5e-2), (
        jnp.max(jnp.abs(y - y_ref)))

    print("KERNEL_OK")
</pallas_src>

<mosaic_0001>
module attributes {stable_mosaic.version = 11 : i64} {
  func.func @_sigmoid_dnn_kernel(%arg0: i32, %arg1: memref<128x128xbf16, #tpu.memory_space<vmem>>, %arg2: memref<128x128xbf16, #tpu.memory_space<vmem>>, %arg3: memref<1x128xf32, #tpu.memory_space<vmem>>, %arg4: memref<128x128xbf16, #tpu.memory_space<vmem>>, %arg5: memref<1x128xf32, #tpu.memory_space<vmem>>, %arg6: memref<128x128xbf16, #tpu.memory_space<vmem>>, %arg7: memref<1x128xf32, #tpu.memory_space<vmem>>, %arg8: memref<128x128xf32, #tpu.memory_space<vmem>>) attributes {dimension_semantics = [#tpu.dimension_semantics<parallel>], iteration_bounds = array<i64: 1>, scalar_prefetch = 0 : i64, scratch_operands = 0 : i64, tpu.core_type = #tpu.core_type<tc>, window_params = [{transform_indices = @transform_0, window_bounds = array<i64: 128, 128>}, {pipeline_mode = #tpu.pipeline_mode<synchronous>, transform_indices = @transform_1, window_bounds = array<i64: 128, 128>}, {pipeline_mode = #tpu.pipeline_mode<synchronous>, transform_indices = @transform_2, window_bounds = array<i64: 1, 128>}, {pipeline_mode = #tpu.pipeline_mode<synchronous>, transform_indices = @transform_3, window_bounds = array<i64: 128, 128>}, {pipeline_mode = #tpu.pipeline_mode<synchronous>, transform_indices = @transform_4, window_bounds = array<i64: 1, 128>}, {pipeline_mode = #tpu.pipeline_mode<synchronous>, transform_indices = @transform_5, window_bounds = array<i64: 128, 128>}, {pipeline_mode = #tpu.pipeline_mode<synchronous>, transform_indices = @transform_6, window_bounds = array<i64: 1, 128>}, {transform_indices = @transform_7, window_bounds = array<i64: 128, 128>}]} {
    %c0 = arith.constant 0 : index
    %c0_0 = arith.constant 0 : index
    %0 = vector.load %arg1[%c0, %c0_0] : memref<128x128xbf16, #tpu.memory_space<vmem>>, vector<128x128xbf16>
    %c0_1 = arith.constant 0 : index
    %c0_2 = arith.constant 0 : index
    %1 = vector.load %arg2[%c0_1, %c0_2] : memref<128x128xbf16, #tpu.memory_space<vmem>>, vector<128x128xbf16>
    %cst = arith.constant dense<0.000000e+00> : vector<128x128xf32>
    %2 = tpu.matmul %0, %1, %cst {dimension_numbers = #tpu.dot_dimension_numbers<[1], [0], [0], [1], [0, 0, 1, 1], [], []>} : vector<128x128xbf16>, vector<128x128xbf16>, vector<128x128xf32> -> vector<128x128xf32>
    %c0_3 = arith.constant 0 : index
    %c0_4 = arith.constant 0 : index
    %3 = vector.load %arg3[%c0_3, %c0_4] : memref<1x128xf32, #tpu.memory_space<vmem>>, vector<1x128xf32>
    %4 = vector.broadcast %3 : vector<1x128xf32> to vector<128x128xf32>
    %5 = arith.addf %2, %4 : vector<128x128xf32>
    %6 = arith.negf %5 : vector<128x128xf32>
    %7 = math.exp %6 : vector<128x128xf32>
    %cst_5 = arith.constant 1.000000e+00 : f32
    %8 = vector.broadcast %cst_5 : f32 to vector<128x128xf32>
    %9 = arith.addf %8, %7 : vector<128x128xf32>
    %10 = arith.divf %8, %9 : vector<128x128xf32>
    %11 = arith.truncf %10 : vector<128x128xf32> to vector<128x128xbf16>
    %c0_6 = arith.constant 0 : index
    %c0_7 = arith.constant 0 : index
    %12 = vector.load %arg4[%c0_6, %c0_7] : memref<128x128xbf16, #tpu.memory_space<vmem>>, vector<128x128xbf16>
    %cst_8 = arith.constant dense<0.000000e+00> : vector<128x128xf32>
    %13 = tpu.matmul %11, %12, %cst_8 {dimension_numbers = #tpu.dot_dimension_numbers<[1], [0], [0], [1], [0, 0, 1, 1], [], []>} : vector<128x128xbf16>, vector<128x128xbf16>, vector<128x128xf32> -> vector<128x128xf32>
    %c0_9 = arith.constant 0 : index
    %c0_10 = arith.constant 0 : index
    %14 = vector.load %arg5[%c0_9, %c0_10] : memref<1x128xf32, #tpu.memory_space<vmem>>, vector<1x128xf32>
    %15 = vector.broadcast %14 : vector<1x128xf32> to vector<128x128xf32>
    %16 = arith.addf %13, %15 : vector<128x128xf32>
    %17 = arith.negf %16 : vector<128x128xf32>
    %18 = math.exp %17 : vector<128x128xf32>
    %cst_11 = arith.constant 1.000000e+00 : f32
    %19 = vector.broadcast %cst_11 : f32 to vector<128x128xf32>
    %20 = arith.addf %19, %18 : vector<128x128xf32>
    %21 = arith.divf %19, %20 : vector<128x128xf32>
    %22 = arith.truncf %21 : vector<128x128xf32> to vector<128x128xbf16>
    %c0_12 = arith.constant 0 : index
    %c0_13 = arith.constant 0 : index
    %23 = vector.load %arg6[%c0_12, %c0_13] : memref<128x128xbf16, #tpu.memory_space<vmem>>, vector<128x128xbf16>
    %cst_14 = arith.constant dense<0.000000e+00> : vector<128x128xf32>
    %24 = tpu.matmul %22, %23, %cst_14 {dimension_numbers = #tpu.dot_dimension_numbers<[1], [0], [0], [1], [0, 0, 1, 1], [], []>} : vector<128x128xbf16>, vector<128x128xbf16>, vector<128x128xf32> -> vector<128x128xf32>
    %c0_15 = arith.constant 0 : index
    %c0_16 = arith.constant 0 : index
    %25 = vector.load %arg7[%c0_15, %c0_16] : memref<1x128xf32, #tpu.memory_space<vmem>>, vector<1x128xf32>
    %26 = vector.broadcast %25 : vector<1x128xf32> to vector<128x128xf32>
    %27 = arith.addf %24, %26 : vector<128x128xf32>
    %c0_17 = arith.constant 0 : index
    %c0_18 = arith.constant 0 : index
    %28 = vector.load %arg8[%c0_17, %c0_18] : memref<128x128xf32, #tpu.memory_space<vmem>>, vector<128x128xf32>
    tpu.vector_store %arg8[%c0_17, %c0_18], %27 {strides = array<i32>} : memref<128x128xf32, #tpu.memory_space<vmem>>, vector<128x128xf32>,
    return
  }
  func.func @transform_0(%arg0: i32) -> (i32, i32) {
    %c0_i32 = arith.constant 0 : i32
    %c0_i32_0 = arith.constant 0 : i32
    return %arg0, %c0_i32 : i32, i32
  }
  func.func @transform_1(%arg0: i32) -> (i32, i32) {
    %c0_i32 = arith.constant 0 : i32
    %c0_i32_0 = arith.constant 0 : i32
    %c0_i32_1 = arith.constant 0 : i32
    return %c0_i32, %c0_i32_0 : i32, i32
  }
  func.func @transform_2(%arg0: i32) -> (i32, i32) {
    %c0_i32 = arith.constant 0 : i32
    %c0_i32_0 = arith.constant 0 : i32
    %c0_i32_1 = arith.constant 0 : i32
    return %c0_i32, %c0_i32_0 : i32, i32
  }
  func.func @transform_3(%arg0: i32) -> (i32, i32) {
    %c0_i32 = arith.constant 0 : i32
    %c0_i32_0 = arith.constant 0 : i32
    %c0_i32_1 = arith.constant 0 : i32
    return %c0_i32, %c0_i32_0 : i32, i32
  }
  func.func @transform_4(%arg0: i32) -> (i32, i32) {
    %c0_i32 = arith.constant 0 : i32
    %c0_i32_0 = arith.constant 0 : i32
    %c0_i32_1 = arith.constant 0 : i32
    return %c0_i32, %c0_i32_0 : i32, i32
  }
  func.func @transform_5(%arg0: i32) -> (i32, i32) {
    %c0_i32 = arith.constant 0 : i32
    %c0_i32_0 = arith.constant 0 : i32
    %c0_i32_1 = arith.constant 0 : i32
    return %c0_i32, %c0_i32_0 : i32, i32
  }
  func.func @transform_6(%arg0: i32) -> (i32, i32) {
    %c0_i32 = arith.constant 0 : i32
    %c0_i32_0 = arith.constant 0 : i32
    %c0_i32_1 = arith.constant 0 : i32
    return %c0_i32, %c0_i32_0 : i32, i32
  }
  func.func @transform_7(%arg0: i32) -> (i32, i32) {
    %c0_i32 = arith.constant 0 : i32
    %c0_i32_0 = arith.constant 0 : i32
    return %arg0, %c0_i32 : i32, i32
  }
}

</mosaic_0001>

<bundles_post_ra>
// kernel: tpu_custom_call.1
= control target key start
LH: loop header
LB: loop body
LE: loop exit
PB: predicated region body
PF: predicated region fallthrough
CT: control target
= control target key end

     0   :  { %12 = vsyncpa [#allocation3], 0  ;;  %s1588_s0 = inlined_call_operand.hbm [shape: bf16[128,128], index: 0, kind: input, shape index: {}]   ;;  %s1589_s1 = inlined_call_operand.hbm [shape: bf16[128,128], index: 1, kind: input, shape index: {}]   ;;  %s1590_s2 = inlined_call_operand.vmem [shape: f32[1,128], index: 2, kind: input, shape index: {}]   ;;  %s1591_s3 = inlined_call_operand.hbm [shape: bf16[128,128], index: 3, kind: input, shape index: {}]   ;;  %s1592_s4 = inlined_call_operand.vmem [shape: f32[1,128], index: 4, kind: input, shape index: {}]   ;;  %s1593_s5 = inlined_call_operand.hbm [shape: bf16[128,128], index: 5, kind: input, shape index: {}]   ;;  %s1594_s6 = inlined_call_operand.vmem [shape: f32[1,128], index: 6, kind: input, shape index: {}]   ;;  %s1595_s7 = inlined_call_operand.hbm [shape: f32[128,128], index: 7, kind: output, shape index: {}]  }
   0x1   :  { %13 = vsyncpa [#allocation6], 0 }
   0x2   :  { %14 = vsyncpa [#allocation9], 0 }
   0x3   :  { %15 = vsyncpa [#allocation4], 0  ;;  %s1408_s24 = smov [#allocation5]   ;;  %s1409_s26 = smov [#allocation2]  }
   0x4   :  { %s33_s25 = sshll.u32 %s1408_s24, 4  ;;  %s21_s27 = sshll.u32 %s1409_s26, 4  ;;  %s34_s25 = int_to_ptr.vmem [resolvable:$true] %s33_s25  ;;  %s1457_s27 = int_to_ptr.vmem [resolvable:$true] %s21_s27 }
   0x5   :  { %s1290_s30 = scalar_lea.hbm %s1589_s1, 1024 }
   0x6   :  { %p1291_p0 = scmp.ne.s32.totalorder %s1589_s1, %s1290_s30  ;;  %p1294_p1 = scmp.lt.u32.totalorder %s1290_s30, %s1589_s1 }
   0x8   :  { %p1296_p2 = pnand %p1294_p1, %p1291_p0 }
   0xa   :  { %1299 = shalt.err (!%p1296_p2)
}
   0xb   :  { %s1300_s12 = scalar_lea.vmem %s34_s25, 1024  ;;  %p1305_p4 = scmp.lt.s32.totalorder %s34_s25, %s34_s25 }
   0xc   :  { %p1301_p3 = scmp.ne.s32.totalorder %s34_s25, %s1300_s12  ;;  %p1306_p5 = scmp.lt.s32.totalorder %s1300_s12, %s1300_s12 }
   0xe   :  { %p1307_p6 = por %p1306_p5, %p1305_p4 }
  0x10   :  { %p1308_p7 = pnand %p1307_p6, %p1301_p3 }
  0x12   :  { %1311 = shalt.err (!%p1308_p7)
}
  0x13   :  { %s1410_s13 = smov 64   ;;  %s1411_s14 = smov 4  }
  0x14   :  { %39 = dma.hbm_to_vmem [thread:$0]  %s1589_s1, 1024, %s34_s25, [#allocation6], %s1410_s13, %s1410_s13, %s1411_s14  }
  0x15   :  { %s1312_s19 = scalar_lea.hbm %s1588_s0, 1024 }
  0x16   :  { %p1313_p8 = scmp.ne.s32.totalorder %s1588_s0, %s1312_s19  ;;  %p1316_p9 = scmp.lt.u32.totalorder %s1312_s19, %s1588_s0 }
  0x18   :  { %p1318_p10 = pnand %p1316_p9, %p1313_p8 }
  0x1a   :  { %1321 = shalt.err (!%p1318_p10)
}
  0x1b   :  { %s1322_s24 = scalar_lea.vmem %s1457_s27, 1024  ;;  %p1327_p12 = scmp.lt.s32.totalorder %s1457_s27, %s1457_s27 }
  0x1c   :  { %p1323_p11 = scmp.ne.s32.totalorder %s1457_s27, %s1322_s24  ;;  %p1328_p13 = scmp.lt.s32.totalorder %s1322_s24, %s1322_s24 }
  0x1e   :  { %p1329_p0 = por %p1328_p13, %p1327_p12 }
  0x20   :  { %p1330_p1 = pnand %p1329_p0, %p1323_p11 }
  0x22   :  { %1333 = shalt.err (!%p1330_p1)
}
  0x23   :  { %27 = dma.hbm_to_vmem [thread:$0]  %s1588_s0, 1024, %s1457_s27, [#allocation3], %s1410_s13, %s1410_s13, %s1411_s14  }
  0x24   :  { %s1412_s26 = smov [#allocation7]   ;;  %s1413_s29 = smov [#allocation8]  }
  0x25   :  { %s47_s28 = sshll.u32 %s1412_s26, 4  ;;  %s61_s30 = sshll.u32 %s1413_s29, 4  ;;  %s48_s28 = int_to_ptr.vmem [resolvable:$true] %s47_s28  ;;  %s1494_s30 = int_to_ptr.vmem [resolvable:$true] %s61_s30 }
  0x26   :  { %s1334_s10 = scalar_lea.hbm %s1591_s3, 1024 }
  0x27   :  { %p1335_p2 = scmp.ne.s32.totalorder %s1591_s3, %s1334_s10  ;;  %p1338_p3 = scmp.lt.u32.totalorder %s1334_s10, %s1591_s3 }
  0x29   :  { %p1340_p4 = pnand %p1338_p3, %p1335_p2 }
  0x2b   :  { %1343 = shalt.err (!%p1340_p4)
}
  0x2c   :  { %s1344_s0 = scalar_lea.vmem %s48_s28, 1024  ;;  %p1349_p6 = scmp.lt.s32.totalorder %s48_s28, %s48_s28 }
  0x2d   :  { %p1345_p5 = scmp.ne.s32.totalorder %s48_s28, %s1344_s0  ;;  %p1350_p7 = scmp.lt.s32.totalorder %s1344_s0, %s1344_s0 }
  0x2f   :  { %p1351_p8 = por %p1350_p7, %p1349_p6 }
  0x31   :  { %p1352_p9 = pnand %p1351_p8, %p1345_p5 }
  0x33   :  { %1355 = shalt.err (!%p1352_p9)
}
  0x34   :  { %53 = dma.hbm_to_vmem [thread:$0]  %s1591_s3, 1024, %s48_s28, [#allocation6], %s1410_s13, %s1410_s13, %s1411_s14  }
  0x35   :  { %s1356_s20 = scalar_lea.hbm %s1593_s5, 1024 }
  0x36   :  { %p1357_p10 = scmp.ne.s32.totalorder %s1593_s5, %s1356_s20  ;;  %p1360_p11 = scmp.lt.u32.totalorder %s1356_s20, %s1593_s5 }
  0x38   :  { %p1362_p12 = pnand %p1360_p11, %p1357_p10 }
  0x3a   :  { %1365 = shalt.err (!%p1362_p12)
}
  0x3b   :  { %s1366_s1 = scalar_lea.vmem %s1494_s30, 1024  ;;  %p1371_p0 = scmp.lt.s32.totalorder %s1494_s30, %s1494_s30 }
  0x3c   :  { %p1367_p13 = scmp.ne.s32.totalorder %s1494_s30, %s1366_s1  ;;  %p1372_p1 = scmp.lt.s32.totalorder %s1366_s1, %s1366_s1 }
  0x3e   :  { %p1373_p2 = por %p1372_p1, %p1371_p0 }
  0x40   :  { %p1374_p3 = pnand %p1373_p2, %p1367_p13 }
  0x42   :  { %1377 = shalt.err (!%p1374_p3)
}
  0x43   :  { %67 = dma.hbm_to_vmem [thread:$0]  %s1593_s5, 1024, %s1494_s30, [#allocation9], %s1410_s13, %s1410_s13, %s1411_s14  }
  0x44   :  { %1400 = dma.done.wait [#allocation3], 1024  }
  0x45   :  { %1401 = vsyncadd [#allocation3], 4294966272 }
  0x46   :  { %1402 = dma.done.wait [#allocation6], 2048  }
  0x47   :  { %1403 = vsyncadd [#allocation6], 4294965248 }
  0x48   :  { %1404 = dma.done.wait [#allocation9], 1024  }
  0x49   :  { %1405 = vsyncadd [#allocation9], 4294966272  ;;  %v1130_v0 = vld [vmem:[#allocation5] sm:$0xff]   ;;  %v1131_v1 = vld [vmem:[#allocation5 + $0x8] sm:$0xff]  }
  0x4a   :  { %1009 = vmatprep.subr.bf16.mxu0 %v1130_v0  ;;  %v1132_v2 = vld [vmem:[#allocation5 + $0x10] sm:$0xff]   ;;  %v1133_v3 = vld [vmem:[#allocation5 + $0x18] sm:$0xff]   ;;  %v1138_v4 = vld [vmem:[#allocation2] sm:$0xff]  }
  0x4b   :  { %1010 = vmatpush3.bf16.msra.mxu0 %v1130_v0  ;;  %1025 = vmatprep.mubr.bf16.mxu0 %v1138_v4  ;;  %v1134_v5 = vld [vmem:[#allocation5 + $0x20] sm:$0xff]   ;;  %v1135_v6 = vld [vmem:[#allocation5 + $0x28] sm:$0xff]   ;;  %v1136_v7 = vld [vmem:[#allocation5 + $0x30] sm:$0xff]  }
  0x4c   :  { %1011 = vmatprep.subr.bf16.mxu0 %v1131_v1  ;;  %v1137_v8 = vld [vmem:[#allocation5 + $0x38] sm:$0xff]   ;;  %v1139_v9 = vld [vmem:[#allocation2 + $0x8] sm:$0xff]   ;;  %v1140_v10 = vld [vmem:[#allocation2 + $0x10] sm:$0xff]  }
  0x4d   :  { %v1141_v11 = vld [vmem:[#allocation2 + $0x18] sm:$0xff]   ;;  %v1142_v12 = vld [vmem:[#allocation2 + $0x20] sm:$0xff]   ;;  %v1143_v13 = vld [vmem:[#allocation2 + $0x28] sm:$0xff]  }
  0x4e   :  { %v1144_v14 = vld [vmem:[#allocation2 + $0x30] sm:$0xff]   ;;  %v1145_v15 = vld [vmem:[#allocation2 + $0x38] sm:$0xff]   ;;  %v1146_v16 = vld [vmem:[#allocation7] sm:$0xff]  }
  0x4f   :  { %1012 = vmatpush3.bf16.msra.mxu0 %v1131_v1  ;;  %1041 = vmatprep.subr.bf16.mxu1 %v1146_v16  ;;  %v1147_v17 = vld [vmem:[#allocation7 + $0x8] sm:$0xff]   ;;  %v1148_v18 = vld [vmem:[#allocation7 + $0x10] sm:$0xff]   ;;  %v1149_v19 = vld [vmem:[#allocation7 + $0x18] sm:$0xff]  }
  0x50   :  { %1013 = vmatprep.subr.bf16.mxu0 %v1132_v2  ;;  %1042 = vmatpush3.bf16.msra.mxu1 %v1146_v16  ;;  %v1150_v20 = vld [vmem:[#allocation7 + $0x20] sm:$0xff]   ;;  %v1151_v21 = vld [vmem:[#allocation7 + $0x28] sm:$0xff]   ;;  %v1152_v22 = vld [vmem:[#allocation7 + $0x30] sm:$0xff]  }
  0x51   :  { %1043 = vmatprep.subr.bf16.mxu1 %v1147_v17  ;;  %v1153_v23 = vld [vmem:[#allocation7 + $0x38] sm:$0xff]   ;;  %v1534_v24 = vld [vmem:[%s1590_s2] ss:$0 sm:$0xff] }
  0x53   :  { %1014 = vmatpush3.bf16.msra.mxu0 %v1132_v2 }
  0x54   :  { %1015 = vmatprep.subr.bf16.mxu0 %v1133_v3  ;;  %1044 = vmatpush3.bf16.msra.mxu1 %v1147_v17 }
  0x55   :  { %1045 = vmatprep.subr.bf16.mxu1 %v1148_v18 }
  0x57   :  { %1016 = vmatpush3.bf16.msra.mxu0 %v1133_v3 }
  0x58   :  { %1017 = vmatprep.subr.bf16.mxu0 %v1134_v5  ;;  %1046 = vmatpush3.bf16.msra.mxu1 %v1148_v18 }
  0x59   :  { %1047 = vmatprep.subr.bf16.mxu1 %v1149_v19 }
  0x5b   :  { %1018 = vmatpush3.bf16.msra.mxu0 %v1134_v5 }
  0x5c   :  { %1019 = vmatprep.subr.bf16.mxu0 %v1135_v6  ;;  %1048 = vmatpush3.bf16.msra.mxu1 %v1149_v19 }
  0x5d   :  { %1049 = vmatprep.subr.bf16.mxu1 %v1150_v20 }
  0x5f   :  { %1020 = vmatpush3.bf16.msra.mxu0 %v1135_v6 }
  0x60   :  { %1021 = vmatprep.subr.bf16.mxu0 %v1136_v7  ;;  %1050 = vmatpush3.bf16.msra.mxu1 %v1150_v20 }
  0x61   :  { %1051 = vmatprep.subr.bf16.mxu1 %v1151_v21 }
  0x63   :  { %1022 = vmatpush3.bf16.msra.mxu0 %v1136_v7 }
  0x64   :  { %1023 = vmatprep.subr.bf16.mxu0 %v1137_v8  ;;  %1052 = vmatpush3.bf16.msra.mxu1 %v1151_v21 }
  0x65   :  { %1053 = vmatprep.subr.bf16.mxu1 %v1152_v22 }
  0x67   :  { %1024 = vmatpush3.bf16.msra.mxu0 %v1137_v8 }
  0x68   :  { %1054 = vmatpush3.bf16.msra.mxu1 %v1152_v22 }
  0x69   :  { %1055 = vmatprep.subr.bf16.mxu1 %v1153_v23 }
  0x6a   :  { %1026 = vmatmul.mubr.bf16.vlgmr.msra.gmra.mrb[0].mxu0 %v1139_v9 }
  0x6b   :  { %1029 = vmatprep.mubr.bf16.mxu0 %v1140_v10 }
  0x6c   :  { %1056 = vmatpush3.bf16.msra.mxu1 %v1153_v23 }
  0x72   :  { %1030 = vmatmul.mubr.bf16.gmra.mrb[4].mxu0 %v1141_v11 }
  0x73   :  { %1033 = vmatprep.mubr.bf16.mxu0 %v1142_v12 }
  0x7a   :  { %1034 = vmatmul.mubr.bf16.gmra.mrb[8].mxu0 %v1143_v13 }
  0x7b   :  { %1037 = vmatprep.mubr.bf16.mxu0 %v1144_v14 }
  0x82   :  { %1038 = vmatmul.mubr.bf16.gmra.mrb[12].mxu0 %v1145_v15 }
 0x13d   :  { %v1027_v25 = vpop.f32.mrb[0].mxu0 }
 0x13e   :  { %v261_v26 = vadd.f32 %v1027_v25, %v1534_v24  ;;  %v252_v27 = vpop.f32.mrb[1].mxu0 }
 0x13f   :  { %v253_v28 = vadd.f32 %v1534_v24, %v252_v27  ;;  %v1028_v29 = vpop.f32.mrb[2].mxu0 }
 0x140   :  { %v913_v30 = vmul.f32 -1.442695, %v261_v26  ;;  %v264_v31 = vadd.f32 %v1028_v29, %v1534_v24  ;;  %v255_v32 = vpop.f32.mrb[3].mxu0 }
 0x141   :  { %v911_v33 = vmul.f32 -1.442695, %v253_v28  ;;  %v256_v34 = vadd.f32 %v1534_v24, %v255_v32 }
 0x142   :  { %1162 = vpow2.f32 %v913_v30  ;;  %v914_v35 = vmul.f32 -1.442695, %v264_v31 }
 0x143   :  { %1164 = vpow2.f32 %v911_v33  ;;  %v912_v36 = vmul.f32 -1.442695, %v256_v34 }
 0x144   :  { %1166 = vpow2.f32 %v914_v35 }
 0x145   :  { %1168 = vpow2.f32 %v912_v36  ;;  %v1031_v37 = vpop.f32.mrb[4].mxu0 }
 0x146   :  { %v277_v38 = vadd.f32 %v1031_v37, %v1534_v24  ;;  %v268_v39 = vpop.f32.mrb[5].mxu0 }
 0x147   :  { %v269_v40 = vadd.f32 %v1534_v24, %v268_v39  ;;  %v1032_v41 = vpop.f32.mrb[6].mxu0 }
 0x148   :  { %v917_v42 = vmul.f32 -1.442695, %v277_v38  ;;  %v280_v43 = vadd.f32 %v1032_v41, %v1534_v24  ;;  %v271_v44 = vpop.f32.mrb[7].mxu0 }
 0x149   :  { %v915_v45 = vmul.f32 -1.442695, %v269_v40  ;;  %v272_v46 = vadd.f32 %v1534_v24, %v271_v44 }
 0x14a   :  { %1170 = vpow2.f32 %v917_v42  ;;  %v918_v47 = vmul.f32 -1.442695, %v280_v43 }
 0x14b   :  { %1172 = vpow2.f32 %v915_v45  ;;  %v916_v48 = vmul.f32 -1.442695, %v272_v46 }
 0x14c   :  { %v1163_v49 = vpop.eup %1162  ;;  %1174 = vpow2.f32 %v918_v47 }
 0x14d   :  { %v1165_v50 = vpop.eup %1164  ;;  %v365_v51 = vadd.f32 1.0, %v1163_v49  ;;  %1176 = vpow2.f32 %v916_v48  ;;  %v1035_v52 = vpop.f32.mrb[8].mxu0 }
 0x14e   :  { %v1167_v53 = vpop.eup %1166  ;;  %v363_v54 = vadd.f32 1.0, %v1165_v50  ;;  %v293_v55 = vadd.f32 %v1035_v52, %v1534_v24  ;;  %v284_v56 = vpop.f32.mrb[9].mxu0 }
 0x14f   :  { %v1169_v57 = vpop.eup %1168  ;;  %1178 = vrcp.f32 %v365_v51  ;;  %v366_v58 = vadd.f32 1.0, %v1167_v53  ;;  %v285_v59 = vadd.f32 %v1534_v24, %v284_v56  ;;  %v1036_v60 = vpop.f32.mrb[10].mxu0 }
 0x150   :  { %1180 = vrcp.f32 %v363_v54  ;;  %v364_v61 = vadd.f32 1.0, %v1169_v57  ;;  %v921_v62 = vmul.f32 -1.442695, %v293_v55  ;;  %v296_v63 = vadd.f32 %v1036_v60, %v1534_v24  ;;  %v287_v0 = vpop.f32.mrb[11].mxu0 }
 0x151   :  { %1182 = vrcp.f32 %v366_v58  ;;  %v919_v1 = vmul.f32 -1.442695, %v285_v59  ;;  %v288_v2 = vadd.f32 %v1534_v24, %v287_v0 }
 0x152   :  { %1184 = vrcp.f32 %v364_v61  ;;  %v922_v3 = vmul.f32 -1.442695, %v296_v63 }
 0x153   :  { %1186 = vpow2.f32 %v921_v62  ;;  %v920_v4 = vmul.f32 -1.442695, %v288_v2  ;;  %v1155_v2 = vld [vmem:[#allocation8 + $0x8] sm:$0xff]  }
 0x154   :  { %v1171_v5 = vpop.eup %1170  ;;  %1188 = vpow2.f32 %v919_v1  ;;  %v1154_v1 = vld [vmem:[#allocation8] sm:$0xff]  }
 0x155   :  { %v1173_v6 = vpop.eup %1172  ;;  %v369_v7 = vadd.f32 1.0, %v1171_v5  ;;  %1190 = vpow2.f32 %v922_v3  ;;  %v1039_v8 = vpop.f32.mrb[12].mxu0  ;;  %1073 = vmatprep.subr.bf16.mxu0 %v1154_v1  ;;  %1105 = vmatprep.subr.bf16.mxu1 %v1154_v1  ;;  %v1156_v3 = vld [vmem:[#allocation8 + $0x10] sm:$0xff]   ;;  %v1158_v5 = vld [vmem:[#allocation8 + $0x20] sm:$0xff]  }
 0x156   :  { %v1175_v9 = vpop.eup %1174  ;;  %v367_v10 = vadd.f32 1.0, %v1173_v6  ;;  %1192 = vpow2.f32 %v920_v4  ;;  %v309_v11 = vadd.f32 %v1039_v8, %v1534_v24  ;;  %v300_v12 = vpop.f32.mrb[13].mxu0  ;;  %1074 = vmatpush3.bf16.msra.mxu0 %v1154_v1  ;;  %v1157_v4 = vld [vmem:[#allocation8 + $0x18] sm:$0xff]   ;;  %v1159_v6 = vld [vmem:[#allocation8 + $0x28] sm:$0xff]  }
 0x157   :  { %v1177_v13 = vpop.eup %1176  ;;  %1194 = vrcp.f32 %v369_v7  ;;  %v370_v14 = vadd.f32 1.0, %v1175_v9  ;;  %v301_v15 = vadd.f32 %v1534_v24, %v300_v12  ;;  %v1040_v16 = vpop.f32.mrb[14].mxu0  ;;  %1075 = vmatprep.subr.bf16.mxu0 %v1155_v2  ;;  %v1160_v7 = vld [vmem:[#allocation8 + $0x30] sm:$0xff]   ;;  %v1161_v8 = vld [vmem:[#allocation8 + $0x38] sm:$0xff]   ;;  %v1555_v9 = vld [vmem:[%s1592_s4] ss:$0 sm:$0xff] }
 0x158   :  { %1196 = vrcp.f32 %v367_v10  ;;  %v368_v17 = vadd.f32 1.0, %v1177_v13  ;;  %v925_v18 = vmul.f32 -1.442695, %v309_v11  ;;  %v312_v19 = vadd.f32 %v1040_v16, %v1534_v24  ;;  %v303_v20 = vpop.f32.mrb[15].mxu0 }
 0x159   :  { %v1179_v21 = vpop.eup %1178  ;;  %1198 = vrcp.f32 %v370_v14  ;;  %v923_v22 = vmul.f32 -1.442695, %v301_v15  ;;  %v304_v23 = vadd.f32 %v1534_v24, %v303_v20 }
 0x15a   :  { %v1181_v25 = vpop.eup %1180  ;;  %1200 = vrcp.f32 %v368_v17  ;;  %v926_v26 = vmul.f32 -1.442695, %v312_v19  ;;  %1076 = vmatpush3.bf16.msra.mxu0 %v1155_v2 }
 0x15b   :  { %v1183_v27 = vpop.eup %1182  ;;  %1202 = vpow2.f32 %v925_v18  ;;  %v924_v28 = vmul.f32 -1.442695, %v304_v23  ;;  %1077 = vmatprep.subr.bf16.mxu0 %v1156_v3 }
 0x15c   :  { %v1185_v29 = vpop.eup %1184  ;;  %1204 = vpow2.f32 %v923_v22  ;;  %v412_v30 = vpack.c.bf16 %v1183_v27, %v1179_v21 }
 0x15d   :  { %v1187_v31 = vpop.eup %1186  ;;  %1206 = vpow2.f32 %v926_v26  ;;  %v411_v32 = vpack.c.bf16 %v1185_v29, %v1181_v25 }
 0x15e   :  { %v1189_v33 = vpop.eup %1188  ;;  %v373_v34 = vadd.f32 1.0, %v1187_v31  ;;  %1208 = vpow2.f32 %v924_v28  ;;  %1078 = vmatpush3.bf16.msra.mxu0 %v1156_v3 }
 0x15f   :  { %v1191_v35 = vpop.eup %1190  ;;  %v371_v36 = vadd.f32 1.0, %v1189_v33  ;;  %1057 = vmatprep.mubr.bf16.mxu1 %v411_v32  ;;  %1079 = vmatprep.subr.bf16.mxu0 %v1157_v4 }
 0x160   :  { %v1193_v37 = vpop.eup %1192  ;;  %1210 = vrcp.f32 %v373_v34  ;;  %v374_v24 = vadd.f32 1.0, %v1191_v35  ;;  %1058 = vmatmul.mubr.bf16.vlgmr.msra.gmra.mrb[0].mxu1 %v412_v30 }
 0x161   :  { %v1195_v38 = vpop.eup %1194  ;;  %1212 = vrcp.f32 %v371_v36  ;;  %v372_v39 = vadd.f32 1.0, %v1193_v37  ;;  %1113 = vmatpush3.bf16.msra.mxu1 %v1154_v1 }
 0x162   :  { %v1197_v40 = vpop.eup %1196  ;;  %1214 = vrcp.f32 %v374_v24  ;;  %1106 = vmatprep.subr.bf16.mxu1 %v1155_v2  ;;  %1080 = vmatpush3.bf16.msra.mxu0 %v1157_v4 }
 0x163   :  { %v1199_v41 = vpop.eup %1198  ;;  %1216 = vrcp.f32 %v372_v39  ;;  %1081 = vmatprep.subr.bf16.mxu0 %v1158_v5 }
 0x164   :  { %v1201_v42 = vpop.eup %1200  ;;  %v414_v43 = vpack.c.bf16 %v1199_v41, %v1195_v38 }
 0x165   :  { %v1203_v44 = vpop.eup %1202  ;;  %v413_v45 = vpack.c.bf16 %v1201_v42, %v1197_v40  ;;  %1114 = vmatpush3.bf16.msra.mxu1 %v1155_v2 }
 0x166   :  { %v1205_v46 = vpop.eup %1204  ;;  %v377_v47 = vadd.f32 1.0, %v1203_v44  ;;  %1107 = vmatprep.subr.bf16.mxu1 %v1156_v3  ;;  %1082 = vmatpush3.bf16.msra.mxu0 %v1158_v5 }
 0x167   :  { %v1207_v48 = vpop.eup %1206  ;;  %v375_v49 = vadd.f32 1.0, %v1205_v46  ;;  %1061 = vmatprep.mubr.bf16.mxu1 %v413_v45  ;;  %1083 = vmatprep.subr.bf16.mxu0 %v1159_v6 }
 0x168   :  { %v1209_v50 = vpop.eup %1208  ;;  %1218 = vrcp.f32 %v377_v47  ;;  %v378_v51 = vadd.f32 1.0, %v1207_v48  ;;  %1062 = vmatmul.mubr.bf16.gmra.mrb[4].mxu1 %v414_v43 }
 0x169   :  { %1220 = vrcp.f32 %v375_v49  ;;  %v376_v52 = vadd.f32 1.0, %v1209_v50  ;;  %1115 = vmatpush3.bf16.msra.mxu1 %v1156_v3 }
 0x16a   :  { %v1211_v53 = vpop.eup %1210  ;;  %1222 = vrcp.f32 %v378_v51  ;;  %1108 = vmatprep.subr.bf16.mxu1 %v1157_v4  ;;  %1084 = vmatpush3.bf16.msra.mxu0 %v1159_v6 }
 0x16b   :  { %v1213_v54 = vpop.eup %1212  ;;  %1224 = vrcp.f32 %v376_v52  ;;  %1085 = vmatprep.subr.bf16.mxu0 %v1160_v7 }
 0x16c   :  { %v1215_v55 = vpop.eup %1214 }
 0x16d   :  { %v1217_v56 = vpop.eup %1216  ;;  %v416_v57 = vpack.c.bf16 %v1215_v55, %v1211_v53  ;;  %1116 = vmatpush3.bf16.msra.mxu1 %v1157_v4 }
 0x16e   :  { %v415_v58 = vpack.c.bf16 %v1217_v56, %v1213_v54  ;;  %1109 = vmatprep.subr.bf16.mxu1 %v1158_v5  ;;  %1086 = vmatpush3.bf16.msra.mxu0 %v1160_v7 }
 0x16f   :  { %1087 = vmatprep.subr.bf16.mxu0 %v1161_v8 }
 0x170   :  { %1065 = vmatprep.mubr.bf16.mxu1 %v415_v58 }
 0x171   :  { %1066 = vmatmul.mubr.bf16.gmra.mrb[8].mxu1 %v416_v57 }
 0x172   :  { %v1219_v59 = vpop.eup %1218  ;;  %1117 = vmatpush3.bf16.msra.mxu1 %v1158_v5  ;;  %1088 = vmatpush3.bf16.msra.mxu0 %v1161_v8 }
 0x173   :  { %v1221_v60 = vpop.eup %1220  ;;  %1110 = vmatprep.subr.bf16.mxu1 %v1159_v6 }
 0x174   :  { %v1223_v61 = vpop.eup %1222 }
 0x175   :  { %v1225_v62 = vpop.eup %1224  ;;  %v418_v63 = vpack.c.bf16 %v1223_v61, %v1219_v59 }
 0x176   :  { %v417_v0 = vpack.c.bf16 %v1225_v62, %v1221_v60  ;;  %1118 = vmatpush3.bf16.msra.mxu1 %v1159_v6 }
 0x177   :  { %1111 = vmatprep.subr.bf16.mxu1 %v1160_v7 }
 0x178   :  { %1069 = vmatprep.mubr.bf16.mxu1 %v417_v0 }
 0x179   :  { %1070 = vmatmul.mubr.bf16.gmra.mrb[12].mxu1 %v418_v63 }
 0x17a   :  { %1119 = vmatpush3.bf16.msra.mxu1 %v1160_v7 }
 0x17b   :  { %1112 = vmatprep.subr.bf16.mxu1 %v1161_v8 }
 0x17e   :  { %1120 = vmatpush3.bf16.msra.mxu1 %v1161_v8 }
 0x233   :  { %v1059_v10 = vpop.f32.mrb[0].mxu1 }
 0x234   :  { %v533_v11 = vadd.f32 %v1059_v10, %v1555_v9  ;;  %v524_v12 = vpop.f32.mrb[1].mxu1 }
 0x235   :  { %v525_v13 = vadd.f32 %v1555_v9, %v524_v12  ;;  %v1060_v14 = vpop.f32.mrb[2].mxu1 }
 0x236   :  { %v938_v15 = vmul.f32 -1.442695, %v533_v11  ;;  %v536_v16 = vadd.f32 %v1060_v14, %v1555_v9  ;;  %v527_v17 = vpop.f32.mrb[3].mxu1 }
 0x237   :  { %v936_v18 = vmul.f32 -1.442695, %v525_v13  ;;  %v528_v19 = vadd.f32 %v1555_v9, %v527_v17 }
 0x238   :  { %1226 = vpow2.f32 %v938_v15  ;;  %v939_v20 = vmul.f32 -1.442695, %v536_v16 }
 0x239   :  { %1228 = vpow2.f32 %v936_v18  ;;  %v937_v21 = vmul.f32 -1.442695, %v528_v19 }
 0x23a   :  { %1230 = vpow2.f32 %v939_v20 }
 0x23b   :  { %1232 = vpow2.f32 %v937_v21  ;;  %v1063_v22 = vpop.f32.mrb[4].mxu1 }
 0x23c   :  { %v549_v23 = vadd.f32 %v1063_v22, %v1555_v9  ;;  %v540_v25 = vpop.f32.mrb[5].mxu1 }
 0x23d   :  { %v541_v26 = vadd.f32 %v1555_v9, %v540_v25  ;;  %v1064_v27 = vpop.f32.mrb[6].mxu1 }
 0x23e   :  { %v942_v28 = vmul.f32 -1.442695, %v549_v23  ;;  %v552_v29 = vadd.f32 %v1064_v27, %v1555_v9  ;;  %v543_v30 = vpop.f32.mrb[7].mxu1 }
 0x23f   :  { %v940_v31 = vmul.f32 -1.442695, %v541_v26  ;;  %v544_v32 = vadd.f32 %v1555_v9, %v543_v30 }
 0x240   :  { %1234 = vpow2.f32 %v942_v28  ;;  %v943_v33 = vmul.f32 -1.442695, %v552_v29 }
 0x241   :  { %1236 = vpow2.f32 %v940_v31  ;;  %v941_v34 = vmul.f32 -1.442695, %v544_v32 }
 0x242   :  { %v1227_v35 = vpop.eup %1226  ;;  %1238 = vpow2.f32 %v943_v33 }
 0x243   :  { %v1229_v36 = vpop.eup %1228  ;;  %v637_v37 = vadd.f32 1.0, %v1227_v35  ;;  %1240 = vpow2.f32 %v941_v34 }
 0x244   :  { %v1231_v24 = vpop.eup %1230  ;;  %v635_v38 = vadd.f32 1.0, %v1229_v36  ;;  %v1067_v39 = vpop.f32.mrb[8].mxu1 }
 0x245   :  { %v1233_v40 = vpop.eup %1232  ;;  %1242 = vrcp.f32 %v637_v37  ;;  %v638_v41 = vadd.f32 1.0, %v1231_v24  ;;  %v565_v42 = vadd.f32 %v1067_v39, %v1555_v9  ;;  %v556_v43 = vpop.f32.mrb[9].mxu1 }
 0x246   :  { %1244 = vrcp.f32 %v635_v38  ;;  %v636_v44 = vadd.f32 1.0, %v1233_v40  ;;  %v557_v45 = vadd.f32 %v1555_v9, %v556_v43  ;;  %v1068_v46 = vpop.f32.mrb[10].mxu1 }
 0x247   :  { %1246 = vrcp.f32 %v638_v41  ;;  %v946_v47 = vmul.f32 -1.442695, %v565_v42  ;;  %v568_v48 = vadd.f32 %v1068_v46, %v1555_v9  ;;  %v559_v49 = vpop.f32.mrb[11].mxu1 }
 0x248   :  { %1248 = vrcp.f32 %v636_v44  ;;  %v944_v50 = vmul.f32 -1.442695, %v557_v45  ;;  %v560_v51 = vadd.f32 %v1555_v9, %v559_v49 }
 0x249   :  { %1250 = vpow2.f32 %v946_v47  ;;  %v947_v52 = vmul.f32 -1.442695, %v568_v48 }
 0x24a   :  { %v1235_v53 = vpop.eup %1234  ;;  %1252 = vpow2.f32 %v944_v50  ;;  %v945_v54 = vmul.f32 -1.442695, %v560_v51  ;;  %v952_v50 = vld [vmem:[%s1594_s6] ss:$0 sm:$0xff]  ;;  %s1414_s6 = smov [#allocation10]  }
 0x24b   :  { %v1237_v55 = vpop.eup %1236  ;;  %v641_v56 = vadd.f32 1.0, %v1235_v53  ;;  %1254 = vpow2.f32 %v947_v52  ;;  %s880_s28 = sshll.u32 %s1414_s6, 4  ;;  %s881_s28 = int_to_ptr.vmem [resolvable:$true] %s880_s28 }
 0x24c   :  { %v1239_v57 = vpop.eup %1238  ;;  %v639_v58 = vadd.f32 1.0, %v1237_v55  ;;  %1256 = vpow2.f32 %v945_v54  ;;  %v1071_v59 = vpop.f32.mrb[12].mxu1  ;;  %s1378_s29 = scalar_lea.vmem %s881_s28, 2048  ;;  %p1383_p5 = scmp.lt.s32.totalorder %s881_s28, %s881_s28 }
 0x24d   :  { %v1241_v60 = vpop.eup %1240  ;;  %1258 = vrcp.f32 %v641_v56  ;;  %v642_v61 = vadd.f32 1.0, %v1239_v57  ;;  %v581_v62 = vadd.f32 %v1071_v59, %v1555_v9  ;;  %v572_v63 = vpop.f32.mrb[13].mxu1  ;;  %p1379_p4 = scmp.ne.s32.totalorder %s881_s28, %s1378_s29  ;;  %p1384_p6 = scmp.lt.s32.totalorder %s1378_s29, %s1378_s29 }
 0x24e   :  { %1260 = vrcp.f32 %v639_v58  ;;  %v640_v0 = vadd.f32 1.0, %v1241_v60  ;;  %v573_v1 = vadd.f32 %v1555_v9, %v572_v63  ;;  %v1072_v2 = vpop.f32.mrb[14].mxu1 }
 0x24f   :  { %v1243_v3 = vpop.eup %1242  ;;  %1262 = vrcp.f32 %v642_v61  ;;  %v950_v4 = vmul.f32 -1.442695, %v581_v62  ;;  %v584_v5 = vadd.f32 %v1072_v2, %v1555_v9  ;;  %v575_v6 = vpop.f32.mrb[15].mxu1  ;;  %p1385_p7 = por %p1384_p6, %p1383_p5 }
 0x250   :  { %v1245_v7 = vpop.eup %1244  ;;  %1264 = vrcp.f32 %v640_v0  ;;  %v948_v8 = vmul.f32 -1.442695, %v573_v1  ;;  %v576_v10 = vadd.f32 %v1555_v9, %v575_v6 }
 0x251   :  { %v1247_v11 = vpop.eup %1246  ;;  %1266 = vpow2.f32 %v950_v4  ;;  %v951_v12 = vmul.f32 -1.442695, %v584_v5  ;;  %p1386_p8 = pnand %p1385_p7, %p1379_p4 }
 0x252   :  { %v1249_v13 = vpop.eup %1248  ;;  %1268 = vpow2.f32 %v948_v8  ;;  %v949_v14 = vmul.f32 -1.442695, %v576_v10  ;;  %v684_v15 = vpack.c.bf16 %v1247_v11, %v1243_v3 }
 0x253   :  { %v1251_v16 = vpop.eup %1250  ;;  %1270 = vpow2.f32 %v951_v12  ;;  %v683_v17 = vpack.c.bf16 %v1249_v13, %v1245_v7 }
 0x254   :  { %v1253_v18 = vpop.eup %1252  ;;  %v645_v19 = vadd.f32 1.0, %v1251_v16  ;;  %1272 = vpow2.f32 %v949_v14 }
 0x255   :  { %v1255_v20 = vpop.eup %1254  ;;  %v643_v21 = vadd.f32 1.0, %v1253_v18  ;;  %1089 = vmatprep.mubr.bf16.mxu0 %v683_v17 }
 0x256   :  { %v1257_v22 = vpop.eup %1256  ;;  %1274 = vrcp.f32 %v645_v19  ;;  %v646_v23 = vadd.f32 1.0, %v1255_v20  ;;  %1090 = vmatmul.mubr.bf16.vlgmr.msra.gmra.mrb[16].mxu0 %v684_v15 }
 0x257   :  { %v1259_v9 = vpop.eup %1258  ;;  %1276 = vrcp.f32 %v643_v21  ;;  %v644_v25 = vadd.f32 1.0, %v1257_v22 }
 0x258   :  { %v1261_v26 = vpop.eup %1260  ;;  %1278 = vrcp.f32 %v646_v23 }
 0x259   :  { %v1263_v27 = vpop.eup %1262  ;;  %1280 = vrcp.f32 %v644_v25 }
 0x25a   :  { %v1265_v28 = vpop.eup %1264  ;;  %v686_v29 = vpack.c.bf16 %v1263_v27, %v1259_v9 }
 0x25b   :  { %v1267_v30 = vpop.eup %1266  ;;  %v685_v31 = vpack.c.bf16 %v1265_v28, %v1261_v26 }
 0x25c   :  { %v1269_v32 = vpop.eup %1268  ;;  %v649_v33 = vadd.f32 1.0, %v1267_v30 }
 0x25d   :  { %v1271_v34 = vpop.eup %1270  ;;  %v647_v35 = vadd.f32 1.0, %v1269_v32  ;;  %1093 = vmatprep.mubr.bf16.mxu0 %v685_v31 }
 0x25e   :  { %v1273_v36 = vpop.eup %1272  ;;  %1282 = vrcp.f32 %v649_v33  ;;  %v650_v37 = vadd.f32 1.0, %v1271_v34  ;;  %1094 = vmatmul.mubr.bf16.gmra.mrb[20].mxu0 %v686_v29 }
 0x25f   :  { %1284 = vrcp.f32 %v647_v35  ;;  %v648_v24 = vadd.f32 1.0, %v1273_v36 }
 0x260   :  { %v1275_v38 = vpop.eup %1274  ;;  %1286 = vrcp.f32 %v650_v37 }
 0x261   :  { %v1277_v39 = vpop.eup %1276  ;;  %1288 = vrcp.f32 %v648_v24 }
 0x262   :  { %v1279_v40 = vpop.eup %1278 }
 0x263   :  { %v1281_v41 = vpop.eup %1280  ;;  %v688_v42 = vpack.c.bf16 %v1279_v40, %v1275_v38 }
 0x264   :  { %v687_v43 = vpack.c.bf16 %v1281_v41, %v1277_v39 }
 0x266   :  { %1097 = vmatprep.mubr.bf16.mxu1 %v687_v43 }
 0x267   :  { %1098 = vmatmul.mubr.bf16.vlgmr.msra.gmra.mrb[16].mxu1 %v688_v42 }
 0x268   :  { %v1283_v44 = vpop.eup %1282 }
 0x269   :  { %v1285_v45 = vpop.eup %1284 }
 0x26a   :  { %v1287_v46 = vpop.eup %1286 }
 0x26b   :  { %v1289_v47 = vpop.eup %1288  ;;  %v690_v48 = vpack.c.bf16 %v1287_v46, %v1283_v44 }
 0x26c   :  { %v689_v49 = vpack.c.bf16 %v1289_v47, %v1285_v45 }
 0x26e   :  { %1101 = vmatprep.mubr.bf16.mxu1 %v689_v49 }
 0x26f   :  { %1102 = vmatmul.mubr.bf16.gmra.mrb[20].mxu1 %v690_v48 }
 0x329   :  { %v1091_v51 = vpop.f32.mrb[16].mxu0 }
 0x32a   :  { %v805_v52 = vadd.f32 %v1091_v51, %v952_v50  ;;  %v796_v53 = vpop.f32.mrb[17].mxu0 }
 0x32b   :  { %v797_v54 = vadd.f32 %v952_v50, %v796_v53  ;;  %v1092_v55 = vpop.f32.mrb[18].mxu0 }
 0x32c   :  { %861 = vst [vmem:[#allocation10 + $0x10] sm:$0xff] %v805_v52  ;;  %v808_v56 = vadd.f32 %v1092_v55, %v952_v50  ;;  %v799_v57 = vpop.f32.mrb[19].mxu0 }
 0x32d   :  { %859 = vst [vmem:[#allocation10] sm:$0xff] %v797_v54  ;;  %v800_v58 = vadd.f32 %v952_v50, %v799_v57 }
 0x32e   :  { %862 = vst [vmem:[#allocation10 + $0x18] sm:$0xff] %v808_v56 }
 0x32f   :  { %860 = vst [vmem:[#allocation10 + $0x8] sm:$0xff] %v800_v58 }
 0x331   :  { %v1095_v59 = vpop.f32.mrb[20].mxu0 }
 0x332   :  { %v821_v60 = vadd.f32 %v1095_v59, %v952_v50  ;;  %v812_v61 = vpop.f32.mrb[21].mxu0 }
 0x333   :  { %v813_v62 = vadd.f32 %v952_v50, %v812_v61  ;;  %v1096_v63 = vpop.f32.mrb[22].mxu0 }
 0x334   :  { %865 = vst [vmem:[#allocation10 + $0x30] sm:$0xff] %v821_v60  ;;  %v824_v0 = vadd.f32 %v1096_v63, %v952_v50  ;;  %v815_v1 = vpop.f32.mrb[23].mxu0 }
 0x335   :  { %863 = vst [vmem:[#allocation10 + $0x20] sm:$0xff] %v813_v62  ;;  %v816_v2 = vadd.f32 %v952_v50, %v815_v1 }
 0x336   :  { %866 = vst [vmem:[#allocation10 + $0x38] sm:$0xff] %v824_v0 }
 0x337   :  { %864 = vst [vmem:[#allocation10 + $0x28] sm:$0xff] %v816_v2 }
 0x33a   :  { %v1099_v3 = vpop.f32.mrb[16].mxu1 }
 0x33b   :  { %v837_v4 = vadd.f32 %v1099_v3, %v952_v50  ;;  %v828_v5 = vpop.f32.mrb[17].mxu1 }
 0x33c   :  { %v829_v6 = vadd.f32 %v952_v50, %v828_v5  ;;  %v1100_v7 = vpop.f32.mrb[18].mxu1 }
 0x33d   :  { %869 = vst [vmem:[#allocation10 + $0x50] sm:$0xff] %v837_v4  ;;  %v840_v8 = vadd.f32 %v1100_v7, %v952_v50  ;;  %v831_v10 = vpop.f32.mrb[19].mxu1 }
 0x33e   :  { %867 = vst [vmem:[#allocation10 + $0x40] sm:$0xff] %v829_v6  ;;  %v832_v11 = vadd.f32 %v952_v50, %v831_v10 }
 0x33f   :  { %870 = vst [vmem:[#allocation10 + $0x58] sm:$0xff] %v840_v8 }
 0x340   :  { %868 = vst [vmem:[#allocation10 + $0x48] sm:$0xff] %v832_v11 }
 0x342   :  { %v1103_v12 = vpop.f32.mrb[20].mxu1 }
 0x343   :  { %v853_v13 = vadd.f32 %v1103_v12, %v952_v50  ;;  %v844_v14 = vpop.f32.mrb[21].mxu1 }
 0x344   :  { %v845_v15 = vadd.f32 %v952_v50, %v844_v14  ;;  %v1104_v16 = vpop.f32.mrb[22].mxu1 }
 0x345   :  { %873 = vst [vmem:[#allocation10 + $0x70] sm:$0xff] %v853_v13  ;;  %v856_v17 = vadd.f32 %v1104_v16, %v952_v50  ;;  %v847_v18 = vpop.f32.mrb[23].mxu1 }
 0x346   :  { %871 = vst [vmem:[#allocation10 + $0x60] sm:$0xff] %v845_v15  ;;  %v848_v19 = vadd.f32 %v952_v50, %v847_v18 }
 0x347   :  { %874 = vst [vmem:[#allocation10 + $0x78] sm:$0xff] %v856_v17 }
 0x348   :  { %872 = vst [vmem:[#allocation10 + $0x68] sm:$0xff] %v848_v19 }
 0x349   :  { %1389 = shalt.err (!%p1386_p8)
}
 0x34a   :  { %s1390_s9 = scalar_lea.hbm %s1595_s7, 2048 }
 0x34b   :  { %p1391_p9 = scmp.ne.s32.totalorder %s1595_s7, %s1390_s9  ;;  %p1394_p10 = scmp.lt.u32.totalorder %s1390_s9, %s1595_s7 }
 0x34d   :  { %p1396_p11 = pnand %p1394_p10, %p1391_p9 }
 0x34f   :  { %1399 = shalt.err (!%p1396_p11)
}
 0x350   :  { %s1415_s16 = smov 128   ;;  %s1416_s0 = smov 8  }
 0x351   :  { %886 = dma.vmem_to_hbm [thread:$0]  %s881_s28, 2048, %s1595_s7, [#allocation4], %s1415_s16, %s1415_s16, %s1416_s0  }
 0x352   :  { %1406 = dma.done.wait [#allocation4], 2048  }
 0x353   :  { %1407 = vsyncadd [#allocation4], 4294965248 }
 0x354   :  { %890 = vsyncpa [#allocation3], 1 }
 0x355   :  { %891 = vsyncpa [#allocation6], 1 }
 0x356   :  { %892 = vsyncpa [#allocation9], 1 }
 0x357   :  { %893 = vsyncpa [#allocation4], 1 }

</bundles_post_ra>
